<compile_context>
chip_gen: v7x
topology: tpu7x:2x2x1
jax: 0.10.0
libtpu: 0.0.40
codegen_flags: <defaults>
</compile_context>

<pallas_src>
import jax
import jax.numpy as jnp
from jax.experimental import pallas as pl
from jax.experimental.pallas import tpu as pltpu


def _round_up(x, m):
    return -(-x // m) * m


# ---------------------------------------------------------------------------
# kernels (variants selected at trace time by Python flags)
# ---------------------------------------------------------------------------
def _make_kernel(has_bias, multi_k):
    def kernel(*refs):
        it = iter(refs)
        x_ref = next(it)
        wh_ref = next(it)
        wg_ref = next(it)
        bh_ref = next(it) if has_bias else None
        bg_ref = next(it) if has_bias else None
        out_ref = next(it)

        if multi_k:
            acc_h = next(it)
            acc_g = next(it)
            k = pl.program_id(2)

            @pl.when(k == 0)
            def _():
                acc_h[...] = jnp.zeros_like(acc_h)
                acc_g[...] = jnp.zeros_like(acc_g)

            x = x_ref[...]                                   # (tm, tk) bf16
            acc_h[...] += jnp.dot(x, wh_ref[...],
                                  preferred_element_type=jnp.float32)
            acc_g[...] += jnp.dot(x, wg_ref[...],
                                  preferred_element_type=jnp.float32)

            @pl.when(k == pl.num_programs(2) - 1)
            def _():
                h = acc_h[...]
                g = acc_g[...]
                if has_bias:
                    h = h + bh_ref[...]
                    g = g + bg_ref[...]
                out_ref[...] = (h * (g * jax.nn.sigmoid(g))).astype(out_ref.dtype)
        else:
            # K grid collapsed to one step: no accumulator RMW, no pl.when.
            x = x_ref[...]
            h = jnp.dot(x, wh_ref[...], preferred_element_type=jnp.float32)
            g = jnp.dot(x, wg_ref[...], preferred_element_type=jnp.float32)
            if has_bias:
                h = h + bh_ref[...]
                g = g + bg_ref[...]
            out_ref[...] = (h * (g * jax.nn.sigmoid(g))).astype(out_ref.dtype)

    return kernel


# ---------------------------------------------------------------------------
# per-generation tile defaults
# ---------------------------------------------------------------------------
def _default_tiles():
    try:
        kind = jax.devices()[0].device_kind.lower()
    except Exception:
        kind = ""
    if "v5" in kind:
        # v5e: compute/BW ridge ~240 flops/byte, 4x128x128 MXU -> smaller tiles
        return 512, 256, 1024
    # v6e / v7x / unknown: big lane-dense output tiles to beat the ~650 ridge
    return 1024, 512, 1024


# ---------------------------------------------------------------------------
# weight prep (hoist out of the per-call hot path)
# ---------------------------------------------------------------------------
def prepare_swiglu_params(weight, bias=None):
    """weight: (2*dim_out, dim_in) PyTorch layout. Cast to bf16 BEFORE the
    split/transpose (halves the transpose HBM traffic); do this once per
    weight, not per forward call."""
    two_dout, dim_in = weight.shape
    assert two_dout % 2 == 0
    dim_out = two_dout // 2
    w_bf = weight.astype(jnp.bfloat16)
    w_h = w_bf[:dim_out, :].T                        # (dim_in, dim_out) bf16
    w_g = w_bf[dim_out:, :].T
    if bias is not None:
        b_h = bias[:dim_out].astype(jnp.float32).reshape(1, dim_out)
        b_g = bias[dim_out:].astype(jnp.float32).reshape(1, dim_out)
    else:
        b_h = b_g = None
    return w_h, w_g, b_h, b_g


# ---------------------------------------------------------------------------
# wrapper
# ---------------------------------------------------------------------------
def swiglu(x, w_h, w_g, b_h=None, b_g=None, *, tm=None, tn=None, tk=None,
           out_dtype=jnp.bfloat16):
    """SwiGLU forward with pre-packed params (see prepare_swiglu_params).

    x:          (..., dim_in)
    w_h, w_g:   (dim_in, dim_out)   hidden / gate weight halves (bf16)
    b_h, b_g:   (1, dim_out) or None
    returns     (..., dim_out) in out_dtype
    """
    *lead, dim_in = x.shape
    k_w, dim_out = w_h.shape
    assert k_w == dim_in and w_g.shape == (dim_in, dim_out)
    has_bias = b_h is not None

    x2 = x.reshape(-1, dim_in).astype(jnp.bfloat16)
    M = x2.shape[0]

    dtm, dtn, dtk = _default_tiles()
    tm = dtm if tm is None else tm
    tn = dtn if tn is None else tn
    tk = dtk if tk is None else tk

    # Tile constraints: tm is a sublane dim of bf16 tiles -> multiple of 16;
    # tn / tk are lane dims -> multiples of 128 (tk is also a bf16 sublane dim
    # of the weights, which 128 satisfies).  Pad dims to tile multiples.
    def pick(dim, target, mult):
        if dim <= target:
            return _round_up(dim, mult)          # one block covers the dim
        return max(mult, (target // mult) * mult)

    tm = pick(M, tm, 16)
    tn = pick(dim_out, tn, 128)
    tk = pick(dim_in, tk, 128)

    M_pad = _round_up(M, tm)
    N_pad = _round_up(dim_out, tn)
    K_pad = _round_up(dim_in, tk)

    # Megacore (v7x): if both parallel axes collapsed to one block, split M so
    # both TensorCores get work.
    if M_pad // tm == 1 and N_pad // tn == 1 and tm % 32 == 0 and tm >= 256:
        tm //= 2

    grid_m, grid_n, grid_k = M_pad // tm, N_pad // tn, K_pad // tk
    multi_k = grid_k > 1

    # zero-pad (zeros contribute nothing to the matmul; output is sliced back)
    if M_pad != M:
        x2 = jnp.pad(x2, ((0, M_pad - M), (0, 0)))
    if K_pad != dim_in:
        x2 = jnp.pad(x2, ((0, 0), (0, K_pad - dim_in)))
        w_h = jnp.pad(w_h, ((0, K_pad - dim_in), (0, 0)))
        w_g = jnp.pad(w_g, ((0, K_pad - dim_in), (0, 0)))
    if N_pad != dim_out:
        w_h = jnp.pad(w_h, ((0, 0), (0, N_pad - dim_out)))
        w_g = jnp.pad(w_g, ((0, 0), (0, N_pad - dim_out)))
        if has_bias:
            b_h = jnp.pad(b_h, ((0, 0), (0, N_pad - dim_out)))
            b_g = jnp.pad(b_g, ((0, 0), (0, N_pad - dim_out)))

    in_specs = [
        pl.BlockSpec((tm, tk), lambda i, j, k: (i, k)),      # x
        pl.BlockSpec((tk, tn), lambda i, j, k: (k, j)),      # W_hidden
        pl.BlockSpec((tk, tn), lambda i, j, k: (k, j)),      # W_gate
    ]
    args = [x2, w_h.astype(jnp.bfloat16), w_g.astype(jnp.bfloat16)]
    if has_bias:
        in_specs += [
            pl.BlockSpec((1, tn), lambda i, j, k: (0, j)),   # b_hidden
            pl.BlockSpec((1, tn), lambda i, j, k: (0, j)),   # b_gate
        ]
        args += [b_h.astype(jnp.float32), b_g.astype(jnp.float32)]

    scratch_shapes = []
    if multi_k:
        scratch_shapes = [pltpu.VMEM((tm, tn), jnp.float32),   # acc hidden
                          pltpu.VMEM((tm, tn), jnp.float32)]   # acc gate

    # VMEM budget: double-buffered inputs/output + accumulators; cap at 48 MiB
    # so the tile table stays valid on v7x's 64 MiB/TC.
    out_bytes = jnp.dtype(out_dtype).itemsize
    est = (2 * tm * tk * 2                 # x stream (bf16, x2 buffers)
           + 2 * 2 * tk * tn * 2           # two weight streams
           + 2 * tm * tn * out_bytes       # output stream
           + (2 * tm * tn * 4 if multi_k else 0))
    vmem_limit = min(48 * 1024 * 1024, max(32 * 1024 * 1024, int(est * 1.5)))

    out = pl.pallas_call(
        _make_kernel(has_bias, multi_k),
        out_shape=jax.ShapeDtypeStruct((M_pad, N_pad), out_dtype),
        grid_spec=pltpu.PrefetchScalarGridSpec(
            num_scalar_prefetch=0,
            grid=(grid_m, grid_n, grid_k),
            in_specs=in_specs,
            out_specs=pl.BlockSpec((tm, tn), lambda i, j, k: (i, j)),
            scratch_shapes=scratch_shapes,
        ),
        compiler_params=pltpu.CompilerParams(
            # M/N tiles independent -> parallel (v7x megacore); K -> arbitrary.
            dimension_semantics=("parallel", "parallel", "arbitrary"),
            vmem_limit_bytes=vmem_limit,
        ),
    )(*args)

    out = out[:M, :dim_out]
    return out.reshape(*lead, dim_out)


def swiglu_from_linear(x, weight, bias=None, **kwargs):
    """Convenience path from raw nn.Linear params (prep done per call)."""
    w_h, w_g, b_h, b_g = prepare_swiglu_params(weight, bias)
    return swiglu(x, w_h, w_g, b_h, b_g, **kwargs)


# ---------------------------------------------------------------------------
# pure-JAX f32 reference (mirrors the PyTorch forward)
# ---------------------------------------------------------------------------
def swiglu_ref(x, weight, bias=None):
    HP = jax.lax.Precision.HIGHEST
    dim_out = weight.shape[0] // 2
    y = jnp.matmul(x, weight.T, precision=HP)
    if bias is not None:
        y = y + bias
    h, g = y[..., :dim_out], y[..., dim_out:]
    return h * (g * jax.nn.sigmoid(g))


# ---------------------------------------------------------------------------
# main
# ---------------------------------------------------------------------------
if __name__ == "__main__":
    B, S = 2, 128            # batch, sequence
    dim_in, dim_out = 256, 256

    key = jax.random.PRNGKey(0)
    kx, kw, kb = jax.random.split(key, 3)
    x = jax.random.normal(kx, (B, S, dim_in), dtype=jnp.float32)
    weight = (0.02 * jax.random.normal(kw, (2 * dim_out, dim_in))).astype(jnp.float32)
    bias = (0.02 * jax.random.normal(kb, (2 * dim_out,))).astype(jnp.float32)

    # Weight prep (bf16 cast -> split -> transpose) hoisted: once per weight.
    w_h, w_g, b_h, b_g = prepare_swiglu_params(weight, bias)

    ref = swiglu_ref(x, weight, bias)

    # 1) Default per-generation tiles: K collapses to one step (single-shot
    #    kernel, no accumulator scratch), f32 output for a tight check.
    out1 = jax.block_until_ready(
        swiglu(x, w_h, w_g, b_h, b_g, out_dtype=jnp.float32))
    assert out1.shape == ref.shape
    err1 = float(jnp.max(jnp.abs(out1 - ref)))
    assert jnp.allclose(out1, ref, rtol=2e-2, atol=2e-2), f"max_err={err1}"

    # 2) Small tiles: exercises the multi-step K accumulator path + bf16 out.
    out2 = jax.block_until_ready(
        swiglu(x, w_h, w_g, b_h, b_g, tm=128, tn=128, tk=128,
               out_dtype=jnp.bfloat16)).astype(jnp.float32)
    err2 = float(jnp.max(jnp.abs(out2 - ref)))
    assert jnp.allclose(out2, ref, rtol=3e-2, atol=3e-2), f"max_err={err2}"

    # 3) No-bias variant (bias operands / DMAs / adds skipped entirely).
    ref_nb = swiglu_ref(x, weight, None)
    out3 = jax.block_until_ready(
        swiglu_from_linear(x, weight, None, out_dtype=jnp.float32))
    err3 = float(jnp.max(jnp.abs(out3 - ref_nb)))
    assert jnp.allclose(out3, ref_nb, rtol=2e-2, atol=2e-2), f"max_err={err3}"

    print("KERNEL_OK")
</pallas_src>

<mosaic_0001>
module attributes {stable_mosaic.version = 11 : i64} {
  func.func @kernel(%arg0: i32, %arg1: i32, %arg2: i32, %arg3: memref<128x256xbf16, #tpu.memory_space<vmem>>, %arg4: memref<256x256xbf16, #tpu.memory_space<vmem>>, %arg5: memref<256x256xbf16, #tpu.memory_space<vmem>>, %arg6: memref<1x256xf32, #tpu.memory_space<vmem>>, %arg7: memref<1x256xf32, #tpu.memory_space<vmem>>, %arg8: memref<128x256xf32, #tpu.memory_space<vmem>>) attributes {dimension_semantics = [#tpu.dimension_semantics<parallel>, #tpu.dimension_semantics<parallel>, #tpu.dimension_semantics<arbitrary>], iteration_bounds = array<i64: 2, 1, 1>, scalar_prefetch = 0 : i64, scratch_operands = 0 : i64, tpu.core_type = #tpu.core_type<tc>, window_params = [{transform_indices = @transform_0, window_bounds = array<i64: 128, 256>}, {transform_indices = @transform_1, window_bounds = array<i64: 256, 256>}, {transform_indices = @transform_2, window_bounds = array<i64: 256, 256>}, {transform_indices = @transform_3, window_bounds = array<i64: 1, 256>}, {transform_indices = @transform_4, window_bounds = array<i64: 1, 256>}, {transform_indices = @transform_5, window_bounds = array<i64: 128, 256>}]} {
    %c0 = arith.constant 0 : index
    %c0_0 = arith.constant 0 : index
    %0 = vector.load %arg3[%c0, %c0_0] : memref<128x256xbf16, #tpu.memory_space<vmem>>, vector<128x256xbf16>
    %c0_1 = arith.constant 0 : index
    %c0_2 = arith.constant 0 : index
    %1 = vector.load %arg4[%c0_1, %c0_2] : memref<256x256xbf16, #tpu.memory_space<vmem>>, vector<256x256xbf16>
    %cst = arith.constant dense<0.000000e+00> : vector<128x256xf32>
    %2 = tpu.matmul %0, %1, %cst {dimension_numbers = #tpu.dot_dimension_numbers<[1], [0], [0], [1], [0, 0, 1, 1], [], []>} : vector<128x256xbf16>, vector<256x256xbf16>, vector<128x256xf32> -> vector<128x256xf32>
    %c0_3 = arith.constant 0 : index
    %c0_4 = arith.constant 0 : index
    %3 = vector.load %arg5[%c0_3, %c0_4] : memref<256x256xbf16, #tpu.memory_space<vmem>>, vector<256x256xbf16>
    %cst_5 = arith.constant dense<0.000000e+00> : vector<128x256xf32>
    %4 = tpu.matmul %0, %3, %cst_5 {dimension_numbers = #tpu.dot_dimension_numbers<[1], [0], [0], [1], [0, 0, 1, 1], [], []>} : vector<128x256xbf16>, vector<256x256xbf16>, vector<128x256xf32> -> vector<128x256xf32>
    %c0_6 = arith.constant 0 : index
    %c0_7 = arith.constant 0 : index
    %5 = vector.load %arg6[%c0_6, %c0_7] : memref<1x256xf32, #tpu.memory_space<vmem>>, vector<1x256xf32>
    %6 = vector.broadcast %5 : vector<1x256xf32> to vector<128x256xf32>
    %7 = arith.addf %2, %6 : vector<128x256xf32>
    %c0_8 = arith.constant 0 : index
    %c0_9 = arith.constant 0 : index
    %8 = vector.load %arg7[%c0_8, %c0_9] : memref<1x256xf32, #tpu.memory_space<vmem>>, vector<1x256xf32>
    %9 = vector.broadcast %8 : vector<1x256xf32> to vector<128x256xf32>
    %10 = arith.addf %4, %9 : vector<128x256xf32>
    %11 = arith.negf %10 : vector<128x256xf32>
    %12 = math.exp %11 : vector<128x256xf32>
    %cst_10 = arith.constant 1.000000e+00 : f32
    %13 = vector.broadcast %cst_10 : f32 to vector<128x256xf32>
    %14 = arith.addf %13, %12 : vector<128x256xf32>
    %15 = arith.divf %13, %14 : vector<128x256xf32>
    %16 = arith.mulf %10, %15 : vector<128x256xf32>
    %17 = arith.mulf %7, %16 : vector<128x256xf32>
    %c0_11 = arith.constant 0 : index
    %c0_12 = arith.constant 0 : index
    %18 = vector.load %arg8[%c0_11, %c0_12] : memref<128x256xf32, #tpu.memory_space<vmem>>, vector<128x256xf32>
    tpu.vector_store %arg8[%c0_11, %c0_12], %17 {strides = array<i32>} : memref<128x256xf32, #tpu.memory_space<vmem>>, vector<128x256xf32>,
    return
  }
  func.func @transform_0(%arg0: i32, %arg1: i32, %arg2: i32) -> (i32, i32) {
    %c0_i32 = arith.constant 0 : i32
    return %arg0, %arg2 : i32, i32
  }
  func.func @transform_1(%arg0: i32, %arg1: i32, %arg2: i32) -> (i32, i32) {
    %c0_i32 = arith.constant 0 : i32
    return %arg2, %arg1 : i32, i32
  }
  func.func @transform_2(%arg0: i32, %arg1: i32, %arg2: i32) -> (i32, i32) {
    %c0_i32 = arith.constant 0 : i32
    return %arg2, %arg1 : i32, i32
  }
  func.func @transform_3(%arg0: i32, %arg1: i32, %arg2: i32) -> (i32, i32) {
    %c0_i32 = arith.constant 0 : i32
    %c0_i32_0 = arith.constant 0 : i32
    return %c0_i32, %arg1 : i32, i32
  }
  func.func @transform_4(%arg0: i32, %arg1: i32, %arg2: i32) -> (i32, i32) {
    %c0_i32 = arith.constant 0 : i32
    %c0_i32_0 = arith.constant 0 : i32
    return %c0_i32, %arg1 : i32, i32
  }
  func.func @transform_5(%arg0: i32, %arg1: i32, %arg2: i32) -> (i32, i32) {
    %c0_i32 = arith.constant 0 : i32
    return %arg0, %arg1 : i32, i32
  }
}

</mosaic_0001>

<bundles_post_ra>
// kernel: tpu_custom_call.1
= control target key start
LH: loop header
LB: loop body
LE: loop exit
PB: predicated region body
PF: predicated region fallthrough
CT: control target
= control target key end

     0   :  { %10 = vsyncpa [#allocation3], 0  ;;  %s2868_s0 = inlined_call_operand.hbm [shape: bf16[256,256], index: 0, kind: input, shape index: {}]   ;;  %s2869_s1 = inlined_call_operand.hbm [shape: bf16[256,256], index: 1, kind: input, shape index: {}]   ;;  %s2870_s2 = inlined_call_operand.hbm [shape: bf16[256,256], index: 2, kind: input, shape index: {}]   ;;  %s2871_s3 = inlined_call_operand.vmem [shape: f32[1,256], index: 3, kind: input, shape index: {}]   ;;  %s2872_s4 = inlined_call_operand.vmem [shape: f32[1,256], index: 4, kind: input, shape index: {}]   ;;  %s2873_s5 = inlined_call_operand.hbm [shape: f32[256,256], index: 5, kind: output, shape index: {}]  }
   0x1   :  { %12 = vsyncpa [#allocation3 + $0x1], 0 }
   0x2   :  { %13 = vsyncpa [#allocation6], 0 }
   0x3   :  { %14 = vsyncpa [#allocation4], 0 }
   0x4   :  { %16 = vsyncpa [#allocation4 + $0x1], 0  ;;  %s2234_s18 = smov 0   ;;  %s2236_s19 = smov 0  }
   0x5   :  { %s2238_s20 = smov 0   ;;  %s2240_s21 = smov 0  }
   0x6   :  { %s2242_s22 = smov 0   ;;  %s2244_s23 = smov 0  }
   0x7 LB: > { %s1548_s24 = sadd.s32 4294967295, %s2194_s23   ;;  %s1549_s25 = sadd.s32 4294967294, %s2194_s23   ;;  %s2194_s23 = sphi %s2244_s23, %s22_s23   ;;  %s2190_s22 = sphi %s2242_s22, %s2897_s22   ;;  %s2186_s21 = sphi %s2240_s21, %s2896_s21   ;;  %s2182_s20 = sphi %s2238_s20, %s2895_s20   ;;  %s2178_s19 = sphi %s2236_s19, %s2894_s19   ;;  %s2174_s18 = sphi %s2234_s18, %s2893_s18  }
   0x8   : > { %p63_p0 = scmp.ne.s32.totalorder %s2178_s19, %s2174_s18  ;;  %p2268_p1 = scmp.eq.s32.totalorder %s1548_s24, 0 }
   0x9   : > { %p2272_p2 = scmp.eq.s32.totalorder %s1548_s24, 1  ;;  %p203_p3 = scmp.eq.s32.totalorder %s1549_s25, 1 }
   0xa   : > { %s2879_s26 = scalar_select %p2268_p1, 1, 0 }
   0xb   : > { %p2278_p4 = por %p2268_p1, %p63_p0  ;;  %p1550_p5 = scmp.ge.s32.totalorder %s2194_s23, 1 }
   0xc   : > { %p2283_p6 = por %p203_p3, %p63_p0  ;;  %p210_p7 = scmp.lt.s32.totalorder %s2194_s23, 3 }
   0xd   : > { %s2881_s28 = scalar_select %p2278_p4, 1, 0 }
   0xe   : > { %s2882_s29 = scalar_select %p2283_p6, 1, 0 }
   0xf   : > { %p2288_p8 = pnand %p1550_p5, %p210_p7  ;;  %s2196_s6 = smov [#allocation5]  }
  0x10   : > { %s228_s7 = sshll.u32 %s2196_s6, 4  ;;  %s2197_s9 = smov [#allocation7]   ;;  %s2292_s7 = int_to_ptr.vmem [resolvable:$true] %s228_s7 }
  0x11   : > { %p1699_p9 = pneg %p2288_p8  ;;  %s247_s10 = sshll.u32 %s2197_s9, 4  ;;  %s2303_s10 = int_to_ptr.vmem [resolvable:$true] %s247_s10 }
  0x12   : > { %s2022_s13 = scalar_lea.hbm %s2869_s1, 4096 }
  0x13   : > { %p2299_p11 = pnand %p1699_p9, %p2268_p1  ;;  %p2023_p12 = scmp.ne.s32.totalorder %s2869_s1, %s2022_s13 }
  0x14   : > { %p2029_p5 = scmp.lt.u32.totalorder %s2022_s13, %s2869_s1 }
  0x15   : > { %p2024_p13 = pneg %p2299_p11 }
  0x17   : > { %p2025_p0 = pnand %p2024_p13, %p2023_p12 }
  0x19   : > { %p2026_p3 = pneg %p2025_p0 }
  0x1b   : > { %p2031_p7 = pnand %p2029_p5, %p2026_p3 }
  0x1d   : > { %2034 = shalt.err (!%p2031_p7)
}
  0x1e   : > { %s2035_s24 = scalar_lea.vmem %s2292_s7, 4096  ;;  %p2043_p1 = scmp.lt.s32.totalorder %s2292_s7, %s2292_s7 }
  0x1f   : > { %p2036_p9 = scmp.ne.s32.totalorder %s2292_s7, %s2035_s24  ;;  %p2044_p12 = scmp.lt.s32.totalorder %s2035_s24, %s2035_s24 }
  0x21   : > { %p2038_p10 = pnand %p2036_p9, %p2024_p13  ;;  %p2045_p0 = por %p2044_p12, %p2043_p1 }
  0x23   : > { %p2039_p6 = pneg %p2038_p10 }
  0x25   : > { %p2046_p4 = pnand %p2045_p0, %p2039_p6 }
  0x27   : > { %2049 = shalt.err (!%p2046_p4)
}
  0x28   : > { %s2877_s25 = smov 128   ;;  %s2199_s6 = smov 8  }
  0x29   : > { %1702 = dma.hbm_to_vmem [thread:$0]  (!%p2299_p11), %s2869_s1, 4096, %s2292_s7, [#allocation6], %s2877_s25, %s2877_s25, %s2199_s6  }
  0x2a   : > { %s2050_s14 = scalar_lea.hbm %s2870_s2, 4096 }
  0x2b   : > { %p2051_p1 = scmp.ne.s32.totalorder %s2870_s2, %s2050_s14  ;;  %p2057_p10 = scmp.lt.u32.totalorder %s2050_s14, %s2870_s2 }
  0x2d   : > { %p2053_p4 = pnand %p2051_p1, %p2024_p13 }
  0x2f   : > { %p2054_p6 = pneg %p2053_p4 }
  0x31   : > { %p2059_p3 = pnand %p2057_p10, %p2054_p6 }
  0x33   : > { %2062 = shalt.err (!%p2059_p3)
}
  0x34   : > { %s2063_s7 = scalar_lea.vmem %s2303_s10, 4096  ;;  %p2071_p12 = scmp.lt.s32.totalorder %s2303_s10, %s2303_s10 }
  0x35   : > { %p2064_p5 = scmp.ne.s32.totalorder %s2303_s10, %s2063_s7  ;;  %p2072_p0 = scmp.lt.s32.totalorder %s2063_s7, %s2063_s7 }
  0x37   : > { %p2066_p7 = pnand %p2064_p5, %p2024_p13  ;;  %p2073_p1 = por %p2072_p0, %p2071_p12 }
  0x39   : > { %p2067_p9 = pneg %p2066_p7 }
  0x3b   : > { %p2074_p4 = pnand %p2073_p1, %p2067_p9 }
  0x3d   : > { %2077 = shalt.err (!%p2074_p4)
}
  0x3e   : > { %1705 = dma.hbm_to_vmem [thread:$0]  (!%p2299_p11), %s2870_s2, 4096, %s2303_s10, [#allocation6], %s2877_s25, %s2877_s25, %s2199_s6  }
  0x3f   : > { %s41_s8 = sadd.s32 1, %s2190_s22  ;;  %s50_s12 = sadd.s32 1, %s2182_s20 }
  0x40   : > { %p43_p13 = scmp.ge.s32.totalorder %s41_s8, 2  ;;  %p57_p6 = scmp.ne.s32.totalorder %s2182_s20, %s2178_s19 }
  0x41   : > { %p58_p10 = scmp.eq.s32.totalorder %s2194_s23, 0  ;;  %p1716_p3 = scmp.lt.s32.totalorder %s2194_s23, 2 }
  0x42   : > { %s2899_s8 = smov (%p43_p13, %s41_s8), 0  ;;  %p2373_p7 = por %p2272_p2, %p57_p6 }
  0x43   : > { %p59_p5 = por %p58_p10, %p57_p6  ;;  %s45_s14 = ssub.s32 %s2190_s22, %s2899_s8 }
  0x44   : > { %s2885_s13 = scalar_select %p2373_p7, 1, 0 }
  0x45   : > { %s277_s15 = sand.u32 1, %s2182_s20   ;;  %p48_p9 = scmp.eq.s32.totalorder %s45_s14, 0 }
  0x46   : > { %s1556_s10 = sshll.u32 %s277_s15, 7  ;;  %s1684_s16 = sshll.u32 %s2190_s22, 11 }
  0x47   : > { %s2382_s17 = scalar_select %p48_p9, %s2182_s20, %s50_s12  }
  0x48   : > { %s2387_s9 = scalar_lea.hbm %s2868_s0, %s1684_s16  ;;  %s281_s27 = scalar_lea.vmem [#allocation2], %s1556_s10 }
  0x49   : > { %s291_s11 = sshll.u32 %s281_s27, 4  ;;  %p2391_p2 = pnand %p1716_p3, %p59_p5  ;;  %s2395_s11 = int_to_ptr.vmem [resolvable:$true] %s291_s11 }
  0x4a   : > { %s2397_s12 = scalar_lea.sflag [#allocation3], %s277_s15  ;;  %s2078_s14 = scalar_lea.hbm %s2387_s9, 2048 }
  0x4b   : > { %p2079_p11 = scmp.ne.s32.totalorder %s2387_s9, %s2078_s14  ;;  %p2080_p12 = pneg %p2391_p2 }
  0x4c   : > { %s2083_s24 = scalar_lea.hbm %s2868_s0, 4096  ;;  %p2084_p4 = scmp.lt.u32.totalorder %s2387_s9, %s2868_s0 }
  0x4d   : > { %p2081_p0 = pnand %p2080_p12, %p2079_p11  ;;  %p2085_p13 = scmp.lt.u32.totalorder %s2083_s24, %s2078_s14 }
  0x4e   : > { %p2087_p10 = scmp.lt.u32.totalorder %s2078_s14, %s2387_s9 }
  0x4f   : > { %p2082_p1 = pneg %p2081_p0  ;;  %p2086_p6 = por %p2085_p13, %p2084_p4 }
  0x51   : > { %p2088_p3 = por %p2087_p10, %p2086_p6 }
  0x53   : > { %p2089_p5 = pnand %p2088_p3, %p2082_p1 }
  0x55   : > { %2092 = shalt.err (!%p2089_p5)
}
  0x56   : > { %s2093_s15 = scalar_lea.vmem %s2395_s11, 2048  ;;  %s2200_s10 = smov [#allocation2]  }
  0x57   : > { %p2094_p9 = scmp.ne.s32.totalorder %s2395_s11, %s2093_s15  ;;  %s2098_s16 = sshll.u32 %s2200_s10, 4  ;;  %s2099_s16 = int_to_ptr.vmem [resolvable:$false] %s2098_s16 }
  0x58   : > { %s2100_s7 = scalar_lea.vmem %s2099_s16, 4096  ;;  %p2101_p7 = scmp.lt.s32.totalorder %s2395_s11, %s2099_s16 }
  0x59   : > { %p2096_p11 = pnand %p2094_p9, %p2080_p12  ;;  %p2102_p4 = scmp.lt.s32.totalorder %s2100_s7, %s2093_s15 }
  0x5b   : > { %p2097_p0 = pneg %p2096_p11  ;;  %p2103_p13 = por %p2102_p4, %p2101_p7 }
  0x5d   : > { %p2104_p6 = pnand %p2103_p13, %p2097_p0 }
  0x5f   : > { %2107 = shalt.err (!%p2104_p6)
}
  0x60   : > { %s2887_s14 = smov 128   ;;  %303 = sbr.rel (%p2288_p8) target bundleno = 494 (0x1ee), region = 40 }
  0x61   : > { %1709 = dma.hbm_to_vmem [thread:$0]  (!%p2391_p2), %s2387_s9, 2048, %s2395_s11, %s2397_s12, %s2887_s14, %s2887_s14, %s2199_s6  }
  0x62   : > { %s2431_s24 = sand.u32 (!%p2288_p8), 1, %s2178_s19   ;;  %p2888_p7 = scmp.ne.s32.totalorder (!%p2288_p8), %s2881_s28, 0 }
  0x63   : > { %s1561_s27 = sshll.u32 (!%p2288_p8), %s2431_s24, 7  ;;  %s306_s15 = scalar_lea.sflag (!%p2288_p8), [#allocation3], %s2431_s24 }
  0x64   : > { %s2435_s10 = scalar_lea.vmem (!%p2288_p8), [#allocation2], %s1561_s27 }
  0x67   : > { %2161 = dma.done.wait (%p2888_p7), %s306_s15, 2048  }
  0x68   : > { %2163 = vsyncadd (%p2888_p7), %s306_s15, 4294965248  ;;  %p2889_p2 = scmp.ne.s32.totalorder %s2879_s26, 0 }
  0x6a   : > { %2165 = dma.done.wait (%p2889_p2), [#allocation6], 8192  }
  0x6b   : > { %2167 = vsyncadd (%p2889_p2), [#allocation6], 4294959104  ;;  %v1774_v0 = vld [vmem:[#allocation7 + $0x4] ss:$8 sps:$4 sm:$0xff]   ;;  %v1776_v1 = vld [vmem:[#allocation7] ss:$8 sps:$4 sm:$0xff]  }
  0x6c   : > { %987 = vmatprep.subr.bf16.mxu1 %v1774_v0  ;;  %v1777_v2 = vld [vmem:[#allocation7 + $0x14] ss:$8 sps:$4 sm:$0xff]   ;;  %v1779_v3 = vld [vmem:[#allocation7 + $0x10] ss:$8 sps:$4 sm:$0xff]   ;;  %v1780_v4 = vld [vmem:[#allocation7 + $0x24] ss:$8 sps:$4 sm:$0xff]  }
  0x6d   : > { %988 = vmatpush1.bf16.msra.mxu1 %v1776_v1  ;;  %v1782_v5 = vld [vmem:[#allocation7 + $0x20] ss:$8 sps:$4 sm:$0xff]   ;;  %v1783_v6 = vld [vmem:[#allocation7 + $0x34] ss:$8 sps:$4 sm:$0xff]   ;;  %v1794_v7 = vld [vmem:[#allocation5 + $0x4] ss:$8 sps:$4 sm:$0xff]  }
  0x6e   : > { %989 = vmatprep.subr.bf16.mxu1 %v1777_v2  ;;  %v1797_v8 = vld [vmem:[#allocation5] ss:$8 sps:$4 sm:$0xff]   ;;  %v1785_v9 = vld [vmem:[#allocation7 + $0x30] ss:$8 sps:$4 sm:$0xff]   ;;  %702 = vmatprep.subr.bf16.mxu0 %v1794_v7  ;;  %v1786_v10 = vld [vmem:[#allocation7 + $0x44] ss:$8 sps:$4 sm:$0xff]  }
  0x6f   : > { %703 = vmatpush1.bf16.msra.mxu0 %v1797_v8  ;;  %v1800_v11 = vld [vmem:[#allocation5 + $0x14] ss:$8 sps:$4 sm:$0xff]   ;;  %v1803_v12 = vld [vmem:[#allocation5 + $0x10] ss:$8 sps:$4 sm:$0xff]   ;;  %v1788_v13 = vld [vmem:[#allocation7 + $0x40] ss:$8 sps:$4 sm:$0xff]  }
  0x70   : > { %704 = vmatprep.subr.bf16.mxu0 %v1800_v11  ;;  %v1789_v14 = vld [vmem:[#allocation7 + $0x54] ss:$8 sps:$4 sm:$0xff]   ;;  %v1806_v15 = vld [vmem:[#allocation5 + $0x24] ss:$8 sps:$4 sm:$0xff]   ;;  %v1809_v16 = vld [vmem:[#allocation5 + $0x20] ss:$8 sps:$4 sm:$0xff]  }
  0x71   : > { %990 = vmatpush1.bf16.msra.mxu1 %v1779_v3  ;;  %v1812_v17 = vld [vmem:[#allocation5 + $0x34] ss:$8 sps:$4 sm:$0xff]   ;;  %v1791_v18 = vld [vmem:[#allocation7 + $0x50] ss:$8 sps:$4 sm:$0xff]   ;;  %v1792_v19 = vld [vmem:[#allocation7 + $0x64] ss:$8 sps:$4 sm:$0xff]  }
  0x72   : > { %991 = vmatprep.subr.bf16.mxu1 %v1780_v4  ;;  %v1815_v20 = vld [vmem:[#allocation5 + $0x30] ss:$8 sps:$4 sm:$0xff]   ;;  %v1818_v21 = vld [vmem:[#allocation5 + $0x44] ss:$8 sps:$4 sm:$0xff]   ;;  %v1796_v22 = vld [vmem:[#allocation7 + $0x60] ss:$8 sps:$4 sm:$0xff]  }
  0x73   : > { %705 = vmatpush1.bf16.msra.mxu0 %v1803_v12  ;;  %v1798_v23 = vld [vmem:[#allocation7 + $0x74] ss:$8 sps:$4 sm:$0xff]   ;;  %v1821_v24 = vld [vmem:[#allocation5 + $0x40] ss:$8 sps:$4 sm:$0xff]   ;;  %v1802_v26 = vld [vmem:[#allocation7 + $0x70] ss:$8 sps:$4 sm:$0xff]  }
  0x74   : > { %706 = vmatprep.subr.bf16.mxu0 %v1806_v15  ;;  %v1824_v25 = vld [vmem:[#allocation5 + $0x54] ss:$8 sps:$4 sm:$0xff]   ;;  %v1804_v27 = vld [vmem:[#allocation7 + $0x84] ss:$8 sps:$4 sm:$0xff]   ;;  %v1827_v28 = vld [vmem:[#allocation5 + $0x50] ss:$8 sps:$4 sm:$0xff]  }
  0x75   : > { %992 = vmatpush1.bf16.msra.mxu1 %v1782_v5  ;;  %v1830_v29 = vld [vmem:[#allocation5 + $0x64] ss:$8 sps:$4 sm:$0xff]   ;;  %v1808_v30 = vld [vmem:[#allocation7 + $0x80] ss:$8 sps:$4 sm:$0xff]   ;;  %v1810_v31 = vld [vmem:[#allocation7 + $0x94] ss:$8 sps:$4 sm:$0xff]  }
  0x76   : > { %993 = vmatprep.subr.bf16.mxu1 %v1783_v6  ;;  %v1833_v32 = vld [vmem:[#allocation5 + $0x60] ss:$8 sps:$4 sm:$0xff]   ;;  %v1836_v33 = vld [vmem:[#allocation5 + $0x74] ss:$8 sps:$4 sm:$0xff]   ;;  %v1814_v34 = vld [vmem:[#allocation7 + $0x90] ss:$8 sps:$4 sm:$0xff]  }
  0x77   : > { %707 = vmatpush1.bf16.msra.mxu0 %v1809_v16  ;;  %v1816_v35 = vld [vmem:[#allocation7 + $0xa4] ss:$8 sps:$4 sm:$0xff]   ;;  %v1839_v37 = vld [vmem:[#allocation5 + $0x70] ss:$8 sps:$4 sm:$0xff]   ;;  %v1820_v39 = vld [vmem:[#allocation7 + $0xa0] ss:$8 sps:$4 sm:$0xff]   ;;  %v452_v16 = vlaneseq }
  0x78   : > { %708 = vmatprep.subr.bf16.mxu0 %v1812_v17  ;;  %v1854_v36 = vld [vmem:[%s2435_s10 + $0x4] ss:$8 sps:$4 sm:$0xff]   ;;  %v1822_v40 = vld [vmem:[#allocation7 + $0xb4] ss:$8 sps:$4 sm:$0xff]   ;;  %v1845_v41 = vld [vmem:[#allocation5 + $0x80] ss:$8 sps:$4 sm:$0xff]  }
  0x79   : > { %994 = vmatpush1.bf16.msra.mxu1 %v1785_v9  ;;  %v1842_v38 = vld [vmem:[#allocation5 + $0x84] ss:$8 sps:$4 sm:$0xff]   ;;  %1019 = vmatprep.mubr.bf16.mxu1 %v1854_v36  ;;  %v1848_v42 = vld [vmem:[#allocation5 + $0x94] ss:$8 sps:$4 sm:$0xff]   ;;  %v1826_v43 = vld [vmem:[#allocation7 + $0xb0] ss:$8 sps:$4 sm:$0xff]  }
  0x7a   : > { %995 = vmatprep.subr.bf16.mxu1 %v1786_v10  ;;  %734 = vmatprep.mubr.bf16.mxu0 %v1854_v36  ;;  %v1828_v44 = vld [vmem:[#allocation7 + $0xc4] ss:$8 sps:$4 sm:$0xff]   ;;  %v1851_v45 = vld [vmem:[#allocation5 + $0x90] ss:$8 sps:$4 sm:$0xff]   ;;  %v1832_v47 = vld [vmem:[#allocation7 + $0xc0] ss:$8 sps:$4 sm:$0xff]  }
  0x7b   : > { %709 = vmatpush1.bf16.msra.mxu0 %v1815_v20  ;;  %v1855_v46 = vld [vmem:[#allocation5 + $0xa4] ss:$8 sps:$4 sm:$0xff]   ;;  %v1834_v48 = vld [vmem:[#allocation7 + $0xd4] ss:$8 sps:$4 sm:$0xff]   ;;  %v1857_v49 = vld [vmem:[#allocation5 + $0xa0] ss:$8 sps:$4 sm:$0xff]  }
  0x7c   : > { %710 = vmatprep.subr.bf16.mxu0 %v1818_v21  ;;  %v1858_v50 = vld [vmem:[#allocation5 + $0xb4] ss:$8 sps:$4 sm:$0xff]   ;;  %v1838_v51 = vld [vmem:[#allocation7 + $0xd0] ss:$8 sps:$4 sm:$0xff]   ;;  %v1840_v52 = vld [vmem:[#allocation7 + $0xe4] ss:$8 sps:$4 sm:$0xff]  }
  0x7d   : > { %996 = vmatpush1.bf16.msra.mxu1 %v1788_v13  ;;  %v1860_v53 = vld [vmem:[#allocation5 + $0xb0] ss:$8 sps:$4 sm:$0xff]   ;;  %v1864_v54 = vld [vmem:[#allocation5 + $0xc4] ss:$8 sps:$4 sm:$0xff]   ;;  %v1844_v55 = vld [vmem:[#allocation7 + $0xe0] ss:$8 sps:$4 sm:$0xff]  }
  0x7e   : > { %997 = vmatprep.subr.bf16.mxu1 %v1789_v14  ;;  %v1846_v56 = vld [vmem:[#allocation7 + $0xf4] ss:$8 sps:$4 sm:$0xff]   ;;  %v1866_v57 = vld [vmem:[#allocation5 + $0xc0] ss:$8 sps:$4 sm:$0xff]   ;;  %v1850_v59 = vld [vmem:[#allocation7 + $0xf0] ss:$8 sps:$4 sm:$0xff]  }
  0x7f   : > { %711 = vmatpush1.bf16.msra.mxu0 %v1821_v24  ;;  %v1867_v58 = vld [vmem:[#allocation5 + $0xd4] ss:$8 sps:$4 sm:$0xff]   ;;  %v1869_v60 = vld [vmem:[#allocation5 + $0xd0] ss:$8 sps:$4 sm:$0xff]   ;;  %v1873_v61 = vld [vmem:[#allocation5 + $0xe4] ss:$8 sps:$4 sm:$0xff]  }
  0x80   : > { %712 = vmatprep.subr.bf16.mxu0 %v1824_v25  ;;  %v1852_v62 = vld [vmem:[%s2435_s10] ss:$8 sps:$4 sm:$0xff]   ;;  %v1861_v63 = vld [vmem:[%s2435_s10 + $0x14] ss:$8 sps:$4 sm:$0xff]   ;;  %v1878_v2 = vld [vmem:[#allocation5 + $0xf0] ss:$8 sps:$4 sm:$0xff]  }
  0x81   : > { %998 = vmatpush1.bf16.msra.mxu1 %v1791_v18  ;;  %v1875_v0 = vld [vmem:[#allocation5 + $0xe0] ss:$8 sps:$4 sm:$0xff]   ;;  %v1876_v1 = vld [vmem:[#allocation5 + $0xf4] ss:$8 sps:$4 sm:$0xff]   ;;  %v1863_v3 = vld [vmem:[%s2435_s10 + $0x10] ss:$8 sps:$4 sm:$0xff]  }
  0x82   : > { %999 = vmatprep.subr.bf16.mxu1 %v1792_v19  ;;  %v1870_v4 = vld [vmem:[%s2435_s10 + $0x24] ss:$8 sps:$4 sm:$0xff]   ;;  %v1872_v5 = vld [vmem:[%s2435_s10 + $0x20] ss:$8 sps:$4 sm:$0xff]   ;;  %v1879_v6 = vld [vmem:[%s2435_s10 + $0x34] ss:$8 sps:$4 sm:$0xff]  }
  0x83   : > { %713 = vmatpush1.bf16.msra.mxu0 %v1827_v28  ;;  %v1881_v7 = vld [vmem:[%s2435_s10 + $0x30] ss:$8 sps:$4 sm:$0xff]   ;;  %v1882_v8 = vld [vmem:[%s2435_s10 + $0x44] ss:$8 sps:$4 sm:$0xff]   ;;  %v1884_v9 = vld [vmem:[%s2435_s10 + $0x40] ss:$8 sps:$4 sm:$0xff]  }
  0x84   : > { %714 = vmatprep.subr.bf16.mxu0 %v1830_v29  ;;  %v1885_v10 = vld [vmem:[%s2435_s10 + $0x54] ss:$8 sps:$4 sm:$0xff]   ;;  %v1887_v11 = vld [vmem:[%s2435_s10 + $0x50] ss:$8 sps:$4 sm:$0xff]   ;;  %v1888_v12 = vld [vmem:[%s2435_s10 + $0x64] ss:$8 sps:$4 sm:$0xff]  }
  0x85   : > { %1000 = vmatpush1.bf16.msra.mxu1 %v1796_v22  ;;  %v1890_v13 = vld [vmem:[%s2435_s10 + $0x60] ss:$8 sps:$4 sm:$0xff]   ;;  %v1891_v14 = vld [vmem:[%s2435_s10 + $0x74] ss:$8 sps:$4 sm:$0xff]   ;;  %v1893_v15 = vld [vmem:[%s2435_s10 + $0x70] ss:$8 sps:$4 sm:$0xff]  }
  0x86   : > { %1001 = vmatprep.subr.bf16.mxu1 %v1798_v23  ;;  %v2461_v17 = vshrl.u32 %v452_v16, 7  ;;  %v815_v19 = vld [vmem:[%s2872_s4] sm:$0x3]  ;;  %s1564_s6 = sshll.u32 %s2431_s24, 8  ;;  %s1686_s11 = sshll.u32 %s2186_s21, 12 }
  0x87   : > { %715 = vmatpush1.bf16.msra.mxu0 %v1833_v32  ;;  %s2592_s9 = scalar_lea.vmem [#allocation8], %s1564_s6  ;;  %s2814_s7 = scalar_lea.hbm %s2873_s5, %s1686_s11 }
  0x88   : > { %716 = vmatprep.subr.bf16.mxu0 %v1836_v33  ;;  %v454_v18 = vsub.s32 0, %v2461_v17  ;;  %v458_v20 = vsub.s32 1, %v2461_v17  ;;  %s1405_s12 = sshll.u32 %s2592_s9, 4  ;;  %s1389_s14 = scalar_lea.sflag [#allocation4], %s2431_s24  ;;  %s2816_s12 = int_to_ptr.vmem [resolvable:$true] %s1405_s12 }
  0x89   : > { %1002 = vmatpush1.bf16.msra.mxu1 %v1802_v26  ;;  %s2108_s27 = scalar_lea.vmem %s2816_s12, 4096  ;;  %p2890_p12 = scmp.ne.s32.totalorder %s2885_s13, 0 }
  0x8a   : > { %1003 = vmatprep.subr.bf16.mxu1 %v1804_v27  ;;  %v2470_v21 = vrot.slane %v815_v19, %v454_v18  ;;  %v2474_v22 = vrot.slane %v815_v19, %v458_v20  ;;  %p2109_p8 = scmp.ne.s32.totalorder %s2816_s12, %s2108_s27  ;;  %s2201_s15 = smov [#allocation8]  }
  0x8b   : > { %717 = vmatpush1.bf16.msra.mxu0 %v1839_v37  ;;  %s2112_s10 = sshll.u32 %s2201_s15, 4  ;;  %s2113_s10 = int_to_ptr.vmem [resolvable:$false] %s2112_s10 }
  0x8c   : > { %718 = vmatprep.subr.bf16.mxu0 %v1842_v38  ;;  %p2110_p1 = pnand %p2109_p8, %p2890_p12  ;;  %s2114_s26 = scalar_lea.vmem %s2113_s10, 8192 }
  0x8d   : > { %1004 = vmatpush1.bf16.msra.mxu1 %v1808_v30  ;;  %p2115_p3 = scmp.lt.s32.totalorder %s2816_s12, %s2113_s10  ;;  %p2116_p5 = scmp.lt.s32.totalorder %s2114_s26, %s2108_s27 }
  0x8e   : > { %1005 = vmatprep.subr.bf16.mxu1 %v1810_v31  ;;  %p2111_p10 = pneg %p2110_p1 }
  0x8f   : > { %719 = vmatpush1.bf16.msra.mxu0 %v1845_v41  ;;  %p2117_p9 = por %p2116_p5, %p2115_p3 }
  0x90   : > { %720 = vmatprep.subr.bf16.mxu0 %v1848_v42 }
  0x91   : > { %1006 = vmatpush1.bf16.msra.mxu1 %v1814_v34  ;;  %p2118_p11 = pnand %p2117_p9, %p2111_p10 }
  0x92   : > { %1007 = vmatprep.subr.bf16.mxu1 %v1816_v35 }
  0x93   : > { %721 = vmatpush1.bf16.msra.mxu0 %v1851_v45 }
  0x94   : > { %722 = vmatprep.subr.bf16.mxu0 %v1855_v46 }
  0x95   : > { %1008 = vmatpush1.bf16.msra.mxu1 %v1820_v39 }
  0x96   : > { %1009 = vmatprep.subr.bf16.mxu1 %v1822_v40 }
  0x97   : > { %723 = vmatpush1.bf16.msra.mxu0 %v1857_v49 }
  0x98   : > { %724 = vmatprep.subr.bf16.mxu0 %v1858_v50 }
  0x99   : > { %1010 = vmatpush1.bf16.msra.mxu1 %v1826_v43 }
  0x9a   : > { %1011 = vmatprep.subr.bf16.mxu1 %v1828_v44 }
  0x9b   : > { %725 = vmatpush1.bf16.msra.mxu0 %v1860_v53 }
  0x9c   : > { %726 = vmatprep.subr.bf16.mxu0 %v1864_v54 }
  0x9d   : > { %1012 = vmatpush1.bf16.msra.mxu1 %v1832_v47 }
  0x9e   : > { %1013 = vmatprep.subr.bf16.mxu1 %v1834_v48 }
  0x9f   : > { %727 = vmatpush1.bf16.msra.mxu0 %v1866_v57 }
  0xa0   : > { %728 = vmatprep.subr.bf16.mxu0 %v1867_v58 }
  0xa1   : > { %1014 = vmatpush1.bf16.msra.mxu1 %v1838_v51 }
  0xa2   : > { %1015 = vmatprep.subr.bf16.mxu1 %v1840_v52 }
  0xa3   : > { %729 = vmatpush1.bf16.msra.mxu0 %v1869_v60 }
  0xa4   : > { %730 = vmatprep.subr.bf16.mxu0 %v1873_v61 }
  0xa5   : > { %1016 = vmatpush1.bf16.msra.mxu1 %v1844_v55 }
  0xa6   : > { %1017 = vmatprep.subr.bf16.mxu1 %v1846_v56 }
  0xa7   : > { %731 = vmatpush1.bf16.msra.mxu0 %v1875_v0  ;;  %v450_v0 = vld [vmem:[%s2871_s3] sm:$0x3] }
  0xa8   : > { %732 = vmatprep.subr.bf16.mxu0 %v1876_v1  ;;  %v2549_v19 = vrot.slane %v450_v0, %v458_v20 }
  0xa9   : > { %1018 = vmatpush1.bf16.msra.mxu1 %v1850_v59 }
  0xab   : > { %733 = vmatpush1.bf16.msra.mxu0 %v1878_v2 }
  0xac   : > { %1020 = vmatmul.mubr.bf16.vlgmr.msra.gmra.mrb[0].mxu1 %v1852_v62 }
  0xad   : > { %1029 = vmatprep.mubr.bf16.mxu1 %v1861_v63 }
  0xae   : > { %735 = vmatmul.mubr.bf16.vlgmr.msra.gmra.mrb[0].mxu0 %v1852_v62 }
  0xaf   : > { %744 = vmatprep.mubr.bf16.mxu0 %v1861_v63 }
  0xb4   : > { %1030 = vmatmul.mubr.bf16.gmra.mrb[4].mxu1 %v1863_v3 }
  0xb5   : > { %1039 = vmatprep.mubr.bf16.mxu1 %v1870_v4 }
  0xb6   : > { %745 = vmatmul.mubr.bf16.gmra.mrb[4].mxu0 %v1863_v3 }
  0xb7   : > { %754 = vmatprep.mubr.bf16.mxu0 %v1870_v4 }
  0xbc   : > { %1040 = vmatmul.mubr.bf16.gmra.mrb[8].mxu1 %v1872_v5 }
  0xbd   : > { %1049 = vmatprep.mubr.bf16.mxu1 %v1879_v6 }
  0xbe   : > { %755 = vmatmul.mubr.bf16.gmra.mrb[8].mxu0 %v1872_v5 }
  0xbf   : > { %764 = vmatprep.mubr.bf16.mxu0 %v1879_v6 }
  0xc4   : > { %1050 = vmatmul.mubr.bf16.gmra.mrb[12].mxu1 %v1881_v7 }
  0xc5   : > { %1059 = vmatprep.mubr.bf16.mxu1 %v1882_v8 }
  0xc6   : > { %765 = vmatmul.mubr.bf16.gmra.mrb[12].mxu0 %v1881_v7 }
  0xc7   : > { %774 = vmatprep.mubr.bf16.mxu0 %v1882_v8 }
  0xcc   : > { %1060 = vmatmul.mubr.bf16.gmra.mrb[16].mxu1 %v1884_v9 }
  0xcd   : > { %1069 = vmatprep.mubr.bf16.mxu1 %v1885_v10 }
  0xce   : > { %775 = vmatmul.mubr.bf16.gmra.mrb[16].mxu0 %v1884_v9 }
  0xcf   : > { %784 = vmatprep.mubr.bf16.mxu0 %v1885_v10 }
  0xd4   : > { %1070 = vmatmul.mubr.bf16.gmra.mrb[20].mxu1 %v1887_v11 }
  0xd5   : > { %1079 = vmatprep.mubr.bf16.mxu1 %v1888_v12 }
  0xd6   : > { %785 = vmatmul.mubr.bf16.gmra.mrb[20].mxu0 %v1887_v11 }
  0xd7   : > { %794 = vmatprep.mubr.bf16.mxu0 %v1888_v12  ;;  %v2545_v12 = vrot.slane %v450_v0, %v454_v18 }
  0xdc   : > { %1080 = vmatmul.mubr.bf16.gmra.mrb[24].mxu1 %v1890_v13 }
  0xdd   : > { %1089 = vmatprep.mubr.bf16.mxu1 %v1891_v14 }
  0xde   : > { %795 = vmatmul.mubr.bf16.gmra.mrb[24].mxu0 %v1890_v13 }
  0xdf   : > { %804 = vmatprep.mubr.bf16.mxu0 %v1891_v14 }
  0xe4   : > { %1090 = vmatmul.mubr.bf16.gmra.mrb[28].mxu1 %v1893_v15 }
  0xe6   : > { %805 = vmatmul.mubr.bf16.gmra.mrb[28].mxu0 %v1893_v15 }
 0x17f   : > { %v1021_v23 = vpop.f32.mrb[0].mxu1 }
 0x180   : > { %v2477_v24 = vadd.f32 %v1021_v23, %v2470_v21  ;;  %v1023_v25 = vpop.f32.mrb[1].mxu1 }
 0x181   : > { %v2480_v26 = vadd.f32 %v1023_v25, %v2474_v22  ;;  %v1025_v27 = vpop.f32.mrb[2].mxu1  ;;  %v2495_v38 = vpop.f32.mrb[0].mxu0 }
 0x182   : > { %v1645_v28 = vmul.f32 -1.442695, %v2477_v24  ;;  %v2484_v29 = vadd.f32 %v1025_v27, %v2470_v21  ;;  %v1027_v30 = vpop.f32.mrb[3].mxu1  ;;  %v2500_v41 = vpop.f32.mrb[1].mxu0 }
 0x183   : > { %v1646_v31 = vmul.f32 -1.442695, %v2480_v26  ;;  %v2488_v32 = vadd.f32 %v1027_v30, %v2474_v22  ;;  %v2506_v45 = vpop.f32.mrb[2].mxu0 }
 0x184   : > { %1894 = vpow2.f32 %v1645_v28  ;;  %v1647_v33 = vmul.f32 -1.442695, %v2484_v29  ;;  %v2512_v48 = vpop.f32.mrb[3].mxu0 }
 0x185   : > { %1896 = vpow2.f32 %v1646_v31  ;;  %v1648_v34 = vmul.f32 -1.442695, %v2488_v32 }
 0x186   : > { %1898 = vpow2.f32 %v1647_v33  ;;  %v737_v33 = vadd.f32 %v2495_v38, %v2545_v12 }
 0x187   : > { %1900 = vpow2.f32 %v1648_v34  ;;  %v1031_v35 = vpop.f32.mrb[4].mxu1 }
 0x188   : > { %v2493_v36 = vadd.f32 %v1031_v35, %v2470_v21  ;;  %v1033_v37 = vpop.f32.mrb[5].mxu1 }
 0x189   : > { %v2498_v39 = vadd.f32 %v1033_v37, %v2474_v22  ;;  %v1035_v40 = vpop.f32.mrb[6].mxu1  ;;  %v2519_v59 = vpop.f32.mrb[4].mxu0 }
 0x18a   : > { %v1649_v42 = vmul.f32 -1.442695, %v2493_v36  ;;  %v2504_v43 = vadd.f32 %v1035_v40, %v2470_v21  ;;  %v1037_v44 = vpop.f32.mrb[7].mxu1  ;;  %v2527_v1 = vpop.f32.mrb[5].mxu0 }
 0x18b   : > { %v1650_v46 = vmul.f32 -1.442695, %v2498_v39  ;;  %v2510_v47 = vadd.f32 %v1037_v44, %v2474_v22  ;;  %v2533_v6 = vpop.f32.mrb[6].mxu0 }
 0x18c   : > { %1902 = vpow2.f32 %v1649_v42  ;;  %v1651_v49 = vmul.f32 -1.442695, %v2504_v43  ;;  %v2539_v9 = vpop.f32.mrb[7].mxu0 }
 0x18d   : > { %1904 = vpow2.f32 %v1650_v46  ;;  %v1652_v50 = vmul.f32 -1.442695, %v2510_v47 }
 0x18e   : > { %v1895_v51 = vpop.eup %1894  ;;  %1906 = vpow2.f32 %v1651_v49  ;;  %v739_v49 = vadd.f32 %v2500_v41, %v2549_v19 }
 0x18f   : > { %v1897_v52 = vpop.eup %1896  ;;  %v1196_v53 = vadd.f32 1.0, %v1895_v51  ;;  %1908 = vpow2.f32 %v1652_v50  ;;  %v1041_v54 = vpop.f32.mrb[8].mxu1 }
 0x190   : > { %v1899_v55 = vpop.eup %1898  ;;  %v1197_v56 = vadd.f32 1.0, %v1897_v52  ;;  %v2517_v57 = vadd.f32 %v1041_v54, %v2470_v21  ;;  %v1043_v58 = vpop.f32.mrb[9].mxu1 }
 0x191   : > { %v1901_v60 = vpop.eup %1900  ;;  %1910 = vrcp.f32 %v1196_v53  ;;  %v1198_v61 = vadd.f32 1.0, %v1899_v55  ;;  %v2522_v62 = vadd.f32 %v1043_v58, %v2474_v22  ;;  %v1045_v63 = vpop.f32.mrb[10].mxu1  ;;  %v741_v58 = vadd.f32 %v2506_v45, %v2545_v12 }
 0x192   : > { %1912 = vrcp.f32 %v1197_v56  ;;  %v1199_v2 = vadd.f32 1.0, %v1901_v60  ;;  %v1653_v3 = vmul.f32 -1.442695, %v2517_v57  ;;  %v2531_v4 = vadd.f32 %v1045_v63, %v2470_v21  ;;  %v1047_v5 = vpop.f32.mrb[11].mxu1  ;;  %v2554_v18 = vpop.f32.mrb[8].mxu0 }
 0x193   : > { %1914 = vrcp.f32 %v1198_v61  ;;  %v1654_v7 = vmul.f32 -1.442695, %v2522_v62  ;;  %v2537_v8 = vadd.f32 %v1047_v5, %v2474_v22  ;;  %v2561_v34 = vpop.f32.mrb[9].mxu0  ;;  %v747_v5 = vadd.f32 %v2519_v59, %v2545_v12 }
 0x194   : > { %1916 = vrcp.f32 %v1199_v2  ;;  %v1655_v10 = vmul.f32 -1.442695, %v2531_v4  ;;  %v2568_v44 = vpop.f32.mrb[10].mxu0 }
 0x195   : > { %1918 = vpow2.f32 %v1653_v3  ;;  %v1656_v11 = vmul.f32 -1.442695, %v2537_v8  ;;  %v2576_v51 = vpop.f32.mrb[11].mxu0 }
 0x196   : > { %v1903_v13 = vpop.eup %1902  ;;  %1920 = vpow2.f32 %v1654_v7 }
 0x197   : > { %v1905_v14 = vpop.eup %1904  ;;  %v1200_v15 = vadd.f32 1.0, %v1903_v13  ;;  %1922 = vpow2.f32 %v1655_v10  ;;  %v1051_v16 = vpop.f32.mrb[12].mxu1 }
 0x198   : > { %v1907_v23 = vpop.eup %1906  ;;  %v1201_v25 = vadd.f32 1.0, %v1905_v14  ;;  %1924 = vpow2.f32 %v1656_v11  ;;  %v2552_v27 = vadd.f32 %v1051_v16, %v2470_v21  ;;  %v1053_v28 = vpop.f32.mrb[13].mxu1 }
 0x199   : > { %v1909_v30 = vpop.eup %1908  ;;  %1926 = vrcp.f32 %v1200_v15  ;;  %v1202_v31 = vadd.f32 1.0, %v1907_v23  ;;  %v2559_v17 = vadd.f32 %v1053_v28, %v2474_v22  ;;  %v1055_v20 = vpop.f32.mrb[14].mxu1  ;;  %v749_v15 = vadd.f32 %v2527_v1, %v2549_v19 }
 0x19a   : > { %1928 = vrcp.f32 %v1201_v25  ;;  %v1203_v35 = vadd.f32 1.0, %v1909_v30  ;;  %v1657_v37 = vmul.f32 -1.442695, %v2552_v27  ;;  %v2566_v40 = vadd.f32 %v1055_v20, %v2470_v21  ;;  %v1057_v42 = vpop.f32.mrb[15].mxu1  ;;  %v2598_v10 = vpop.f32.mrb[12].mxu0 }
 0x19b   : > { %v1911_v46 = vpop.eup %1910  ;;  %1930 = vrcp.f32 %v1202_v31  ;;  %v1658_v38 = vmul.f32 -1.442695, %v2559_v17  ;;  %v2574_v50 = vadd.f32 %v1057_v42, %v2474_v22  ;;  %v2606_v23 = vpop.f32.mrb[13].mxu0 }
 0x19c   : > { %v1913_v52 = vpop.eup %1912  ;;  %v1292_v53 = vmul.f32 %v1911_v46, %v2477_v24  ;;  %1932 = vrcp.f32 %v1203_v35  ;;  %v1659_v54 = vmul.f32 -1.442695, %v2566_v40  ;;  %v743_v24 = vadd.f32 %v2512_v48, %v2549_v19  ;;  %v2613_v20 = vpop.f32.mrb[14].mxu0 }
 0x19d   : > { %v1915_v55 = vpop.eup %1914  ;;  %v1293_v56 = vmul.f32 %v1913_v52, %v2480_v26  ;;  %1934 = vpow2.f32 %v1657_v37  ;;  %v1660_v41 = vmul.f32 -1.442695, %v2574_v50  ;;  %v2620_v46 = vpop.f32.mrb[15].mxu0 }
 0x19e   : > { %v1917_v60 = vpop.eup %1916  ;;  %v1294_v61 = vmul.f32 %v1915_v55, %v2484_v29  ;;  %v1324_v63 = vmul.f32 %v1292_v53, %v737_v33  ;;  %1936 = vpow2.f32 %v1658_v38  ;;  %v751_v55 = vadd.f32 %v2533_v6, %v2545_v12 }
 0x19f   : > { %v1919_v0 = vpop.eup %1918  ;;  %v1295_v2 = vmul.f32 %v1917_v60, %v2488_v32  ;;  %v1325_v3 = vmul.f32 %v1293_v56, %v739_v49  ;;  %1938 = vpow2.f32 %v1659_v54  ;;  %v1061_v26 = vpop.f32.mrb[16].mxu1  ;;  %v757_v6 = vadd.f32 %v2554_v18, %v2545_v12 }
 0x1a0   : > { %v1921_v45 = vpop.eup %1920  ;;  %v1204_v7 = vadd.f32 1.0, %v1919_v0  ;;  %1356 = vst [vmem:[%s2592_s9] sm:$0xff] %v1324_v63  ;;  %v1326_v29 = vmul.f32 %v1294_v61, %v741_v58  ;;  %1940 = vpow2.f32 %v1660_v41  ;;  %v2596_v48 = vadd.f32 %v1061_v26, %v2470_v21  ;;  %v1063_v32 = vpop.f32.mrb[17].mxu1 }
 0x1a1   : > { %v1923_v11 = vpop.eup %1922  ;;  %v1205_v13 = vadd.f32 1.0, %v1921_v45  ;;  %1357 = vst [vmem:[%s2592_s9 + $0x8] sm:$0xff] %v1325_v3  ;;  %v1327_v59 = vmul.f32 %v1295_v2, %v743_v24  ;;  %v2602_v14 = vadd.f32 %v1063_v32, %v2474_v22  ;;  %v1065_v16 = vpop.f32.mrb[18].mxu1 }
 0x1a2   : > { %v1925_v25 = vpop.eup %1924  ;;  %1942 = vrcp.f32 %v1204_v7  ;;  %v1206_v28 = vadd.f32 1.0, %v1923_v11  ;;  %1358 = vst [vmem:[%s2592_s9 + $0x10] sm:$0xff] %v1326_v29  ;;  %v1661_v30 = vmul.f32 -1.442695, %v2596_v48  ;;  %v2611_v31 = vadd.f32 %v1065_v16, %v2470_v21  ;;  %v1067_v33 = vpop.f32.mrb[19].mxu1 }
 0x1a3   : > { %v1927_v35 = vpop.eup %1926  ;;  %1944 = vrcp.f32 %v1205_v13  ;;  %v1207_v37 = vadd.f32 1.0, %v1925_v25  ;;  %1359 = vst [vmem:[%s2592_s9 + $0x18] sm:$0xff] %v1327_v59  ;;  %v1662_v1 = vmul.f32 -1.442695, %v2602_v14  ;;  %v2618_v42 = vadd.f32 %v1067_v33, %v2474_v22  ;;  %v2638_v26 = vpop.f32.mrb[16].mxu0 }
 0x1a4   : > { %v1929_v38 = vpop.eup %1928  ;;  %v1296_v49 = vmul.f32 %v1927_v35, %v2493_v36  ;;  %1946 = vrcp.f32 %v1206_v28  ;;  %v1663_v52 = vmul.f32 -1.442695, %v2611_v31  ;;  %v753_v36 = vadd.f32 %v2539_v9, %v2549_v19  ;;  %v2644_v29 = vpop.f32.mrb[17].mxu0 }
 0x1a5   : > { %v1931_v53 = vpop.eup %1930  ;;  %v1297_v54 = vmul.f32 %v1929_v38, %v2498_v39  ;;  %1948 = vrcp.f32 %v1207_v37  ;;  %v1664_v56 = vmul.f32 -1.442695, %v2618_v42  ;;  %v2651_v16 = vpop.f32.mrb[18].mxu0  ;;  %v759_v37 = vadd.f32 %v2561_v34, %v2549_v19 }
 0x1a6   : > { %v1933_v58 = vpop.eup %1932  ;;  %v1298_v41 = vmul.f32 %v1931_v53, %v2504_v43  ;;  %1950 = vpow2.f32 %v1661_v30  ;;  %v1328_v60 = vmul.f32 %v1296_v49, %v747_v5  ;;  %v2658_v33 = vpop.f32.mrb[19].mxu0 }
 0x1a7   : > { %v1935_v61 = vpop.eup %1934  ;;  %v1299_v63 = vmul.f32 %v1933_v58, %v2510_v47  ;;  %1952 = vpow2.f32 %v1662_v1  ;;  %v1329_v39 = vmul.f32 %v1297_v54, %v749_v15  ;;  %v1071_v24 = vpop.f32.mrb[20].mxu1 }
 0x1a8   : > { %v1937_v0 = vpop.eup %1936  ;;  %v1208_v2 = vadd.f32 1.0, %v1935_v61  ;;  %1360 = vst [vmem:[%s2592_s9 + $0x20] sm:$0xff] %v1328_v60  ;;  %1954 = vpow2.f32 %v1663_v52  ;;  %v1330_v43 = vmul.f32 %v1298_v41, %v751_v55  ;;  %v2636_v3 = vadd.f32 %v1071_v24, %v2470_v21  ;;  %v1073_v9 = vpop.f32.mrb[21].mxu1 }
 0x1a9   : > { %v1939_v5 = vpop.eup %1938  ;;  %v1209_v47 = vadd.f32 1.0, %v1937_v0  ;;  %1361 = vst [vmem:[%s2592_s9 + $0x28] sm:$0xff] %v1329_v39  ;;  %1956 = vpow2.f32 %v1664_v56  ;;  %v1331_v45 = vmul.f32 %v1299_v63, %v753_v36  ;;  %v2642_v18 = vadd.f32 %v1073_v9, %v2474_v22  ;;  %v1075_v7 = vpop.f32.mrb[22].mxu1 }
 0x1aa   : > { %v1941_v32 = vpop.eup %1940  ;;  %1958 = vrcp.f32 %v1208_v2  ;;  %v1210_v11 = vadd.f32 1.0, %v1939_v5  ;;  %1362 = vst [vmem:[%s2592_s9 + $0x30] sm:$0xff] %v1330_v43  ;;  %v1665_v13 = vmul.f32 -1.442695, %v2636_v3  ;;  %v2649_v59 = vadd.f32 %v1075_v7, %v2470_v21  ;;  %v1077_v15 = vpop.f32.mrb[23].mxu1 }
 0x1ab   : > { %1960 = vrcp.f32 %v1209_v47  ;;  %v1211_v25 = vadd.f32 1.0, %v1941_v32  ;;  %1363 = vst [vmem:[%s2592_s9 + $0x38] sm:$0xff] %v1331_v45  ;;  %v1666_v28 = vmul.f32 -1.442695, %v2642_v18  ;;  %v2656_v30 = vadd.f32 %v1077_v15, %v2474_v22  ;;  %v2675_v63 = vpop.f32.mrb[20].mxu0 }
 0x1ac   : > { %v1943_v35 = vpop.eup %1942  ;;  %1962 = vrcp.f32 %v1210_v11  ;;  %v1667_v1 = vmul.f32 -1.442695, %v2649_v59  ;;  %v761_v55 = vadd.f32 %v2568_v44, %v2545_v12  ;;  %v763_v41 = vadd.f32 %v2576_v51, %v2549_v19 }
 0x1ad   : > { %v1945_v38 = vpop.eup %1944  ;;  %v1300_v49 = vmul.f32 %v1943_v35, %v2517_v57  ;;  %1964 = vrcp.f32 %v1211_v25  ;;  %v1668_v52 = vmul.f32 -1.442695, %v2656_v30  ;;  %v767_v9 = vadd.f32 %v2598_v10, %v2545_v12 }
 0x1ae   : > { %v1947_v53 = vpop.eup %1946  ;;  %v1301_v54 = vmul.f32 %v1945_v38, %v2522_v62  ;;  %1966 = vpow2.f32 %v1665_v13  ;;  %v769_v35 = vadd.f32 %v2606_v23, %v2549_v19 }
 0x1af   : > { %v1949_v56 = vpop.eup %1948  ;;  %v1302_v58 = vmul.f32 %v1947_v53, %v2531_v4  ;;  %v1332_v34 = vmul.f32 %v1300_v49, %v757_v6  ;;  %1968 = vpow2.f32 %v1666_v28  ;;  %v1081_v57 = vpop.f32.mrb[24].mxu1  ;;  %v771_v53 = vadd.f32 %v2613_v20, %v2545_v12 }
 0x1b0   : > { %v1951_v60 = vpop.eup %1950  ;;  %v1303_v36 = vmul.f32 %v1949_v56, %v2537_v8  ;;  %v1333_v61 = vmul.f32 %v1301_v54, %v759_v37  ;;  %1970 = vpow2.f32 %v1667_v1  ;;  %v2673_v62 = vadd.f32 %v1081_v57, %v2470_v21  ;;  %v1083_v44 = vpop.f32.mrb[25].mxu1 }
 0x1b1   : > { %v1953_v39 = vpop.eup %1952  ;;  %v1212_v4 = vadd.f32 1.0, %v1951_v60  ;;  %1364 = vst [vmem:[%s2592_s9 + $0x40] sm:$0xff] %v1332_v34  ;;  %v1334_v24 = vmul.f32 %v1302_v58, %v761_v55  ;;  %1972 = vpow2.f32 %v1668_v52  ;;  %v2679_v51 = vadd.f32 %v1083_v44, %v2474_v22  ;;  %v1085_v6 = vpop.f32.mrb[26].mxu1 }
 0x1b2   : > { %v2681_v8 = vpop.f32.mrb[21].mxu0  ;;  %v1955_v0 = vpop.eup %1954  ;;  %v1213_v2 = vadd.f32 1.0, %v1953_v39  ;;  %1365 = vst [vmem:[%s2592_s9 + $0x48] sm:$0xff] %v1333_v61  ;;  %v1335_v43 = vmul.f32 %v1303_v36, %v763_v41  ;;  %v2687_v5 = vadd.f32 %v1085_v6, %v2470_v21  ;;  %v1669_v11 = vmul.f32 -1.442695, %v2673_v62 }
 0x1b3   : > { %v1087_v47 = vpop.f32.mrb[27].mxu1  ;;  %v2689_v45 = vpop.f32.mrb[22].mxu0  ;;  %1974 = vrcp.f32 %v1212_v4  ;;  %v1214_v32 = vadd.f32 1.0, %v1955_v0  ;;  %1366 = vst [vmem:[%s2592_s9 + $0x50] sm:$0xff] %v1334_v24  ;;  %v1670_v28 = vmul.f32 -1.442695, %v2679_v51  ;;  %v777_v6 = vadd.f32 %v2638_v26, %v2545_v12 }
 0x1b4   : > { %v1957_v7 = vpop.eup %1956  ;;  %v2694_v13 = vadd.f32 %v1087_v47, %v2474_v22  ;;  %v2696_v15 = vpop.f32.mrb[23].mxu0  ;;  %1976 = vrcp.f32 %v1213_v2  ;;  %1367 = vst [vmem:[%s2592_s9 + $0x58] sm:$0xff] %v1335_v43  ;;  %v1671_v38 = vmul.f32 -1.442695, %v2687_v5 }
 0x1b5   : > { %v1959_v25 = vpop.eup %1958  ;;  %v1215_v10 = vadd.f32 1.0, %v1957_v7  ;;  %1978 = vrcp.f32 %v1214_v32  ;;  %v2715_v60 = vpop.f32.mrb[24].mxu0 }
 0x1b6   : > { %v1961_v37 = vpop.eup %1960  ;;  %v1304_v1 = vmul.f32 %v1959_v25, %v2552_v27  ;;  %v1672_v54 = vmul.f32 -1.442695, %v2694_v13  ;;  %v773_v27 = vadd.f32 %v2620_v46, %v2549_v19 }
 0x1b7   : > { %v1963_v49 = vpop.eup %1962  ;;  %v1305_v52 = vmul.f32 %v1961_v37, %v2559_v17  ;;  %1980 = vrcp.f32 %v1215_v10  ;;  %v1091_v58 = vpop.f32.mrb[28].mxu1 }
 0x1b8   : > { %v1965_v55 = vpop.eup %1964  ;;  %v1306_v56 = vmul.f32 %v1963_v49, %v2566_v40  ;;  %1982 = vpow2.f32 %v1669_v11  ;;  %v1336_v23 = vmul.f32 %v1304_v1, %v767_v9  ;;  %v2713_v20 = vadd.f32 %v1091_v58, %v2470_v21  ;;  %v1093_v57 = vpop.f32.mrb[29].mxu1 }
 0x1b9   : > { %v1967_v34 = vpop.eup %1966  ;;  %v1307_v41 = vmul.f32 %v1965_v55, %v2574_v50  ;;  %1984 = vpow2.f32 %v1670_v28  ;;  %v1337_v17 = vmul.f32 %v1305_v52, %v769_v35  ;;  %v2719_v46 = vadd.f32 %v1093_v57, %v2474_v22  ;;  %v1095_v44 = vpop.f32.mrb[30].mxu1 }
 0x1ba   : > { %v1969_v36 = vpop.eup %1968  ;;  %v1216_v40 = vadd.f32 1.0, %v1967_v34  ;;  %1368 = vst [vmem:[%s2592_s9 + $0x60] sm:$0xff] %v1336_v23  ;;  %1986 = vpow2.f32 %v1671_v38  ;;  %v1338_v61 = vmul.f32 %v1306_v56, %v771_v53  ;;  %v2721_v50 = vpop.f32.mrb[25].mxu0  ;;  %v1673_v47 = vmul.f32 -1.442695, %v2713_v20 }
 0x1bb   : > { %v1971_v39 = vpop.eup %1970  ;;  %v1217_v4 = vadd.f32 1.0, %v1969_v36  ;;  %1369 = vst [vmem:[%s2592_s9 + $0x68] sm:$0xff] %v1337_v17  ;;  %1988 = vpow2.f32 %v1672_v54  ;;  %v1339_v24 = vmul.f32 %v1307_v41, %v773_v27  ;;  %v1097_v0 = vpop.f32.mrb[31].mxu1  ;;  %v2731_v7 = vadd.f32 %v1095_v44, %v2470_v21 }
 0x1bc   : > { %v2726_v2 = vpop.f32.mrb[26].mxu0  ;;  %v1973_v43 = vpop.eup %1972  ;;  %1990 = vrcp.f32 %v1216_v40  ;;  %v1218_v9 = vadd.f32 1.0, %v1971_v39  ;;  %1370 = vst [vmem:[%s2592_s9 + $0x70] sm:$0xff] %v1338_v61  ;;  %v1674_v25 = vmul.f32 -1.442695, %v2719_v46  ;;  %v2738_v26 = vadd.f32 %v1097_v0, %v2474_v22 }
 0x1bd   : > { %v2733_v32 = vpop.f32.mrb[27].mxu0  ;;  %1992 = vrcp.f32 %v1217_v4  ;;  %v1219_v11 = vadd.f32 1.0, %v1973_v43  ;;  %1371 = vst [vmem:[%s2592_s9 + $0x78] sm:$0xff] %v1339_v24  ;;  %v1975_v10 = vpop.eup %1974  ;;  %v779_v28 = vadd.f32 %v2644_v29, %v2549_v19  ;;  %v1675_v35 = vmul.f32 -1.442695, %v2731_v7 }
 0x1be   : > { %1994 = vrcp.f32 %v1218_v9  ;;  %v1977_v37 = vpop.eup %1976  ;;  %v1308_v21 = vmul.f32 %v1975_v10, %v2596_v48  ;;  %v1676_v1 = vmul.f32 -1.442695, %v2738_v26  ;;  %v781_v29 = vadd.f32 %v2651_v16, %v2545_v12  ;;  %v2749_v54 = vpop.f32.mrb[28].mxu0 }
 0x1bf   : > { %1996 = vrcp.f32 %v1219_v11  ;;  %v1979_v38 = vpop.eup %1978  ;;  %v1309_v49 = vmul.f32 %v1977_v37, %v2602_v14  ;;  %v783_v14 = vadd.f32 %v2658_v33, %v2549_v19  ;;  %v2754_v23 = vpop.f32.mrb[29].mxu0  ;;  %v787_v36 = vadd.f32 %v2675_v63, %v2545_v12 }
 0x1c0   : > { %1998 = vpow2.f32 %v1673_v47  ;;  %v1310_v52 = vmul.f32 %v1979_v38, %v2611_v31  ;;  %v1340_v53 = vmul.f32 %v1308_v21, %v777_v6  ;;  %v2757_v16 = vpop.f32.mrb[30].mxu0  ;;  %v789_v44 = vadd.f32 %v2681_v8, %v2549_v19 }
 0x1c1   : > { %v1981_v22 = vpop.eup %1980  ;;  %2000 = vpow2.f32 %v1674_v25  ;;  %v1341_v56 = vmul.f32 %v1309_v49, %v779_v28  ;;  %v2760_v17 = vpop.f32.mrb[31].mxu0  ;;  %v791_v9 = vadd.f32 %v2689_v45, %v2545_v12 }
 0x1c2   : > { %v1983_v48 = vpop.eup %1982  ;;  %v1311_v55 = vmul.f32 %v1981_v22, %v2618_v42  ;;  %2002 = vpow2.f32 %v1675_v35  ;;  %1372 = vst [vmem:[%s2592_s9 + $0x80] sm:$0xff] %v1340_v53  ;;  %v1342_v58 = vmul.f32 %v1310_v52, %v781_v29 }
 0x1c3   : > { %v1985_v31 = vpop.eup %1984  ;;  %v1220_v27 = vadd.f32 1.0, %v1983_v48  ;;  %2004 = vpow2.f32 %v1676_v1  ;;  %1373 = vst [vmem:[%s2592_s9 + $0x88] sm:$0xff] %v1341_v56  ;;  %v799_v1 = vadd.f32 %v2721_v50, %v2549_v19  ;;  %v801_v48 = vadd.f32 %v2726_v2, %v2545_v12 }
 0x1c4   : > { %v1987_v34 = vpop.eup %1986  ;;  %v1221_v41 = vadd.f32 1.0, %v1985_v31  ;;  %v1343_v42 = vmul.f32 %v1311_v55, %v783_v14  ;;  %1374 = vst [vmem:[%s2592_s9 + $0x90] sm:$0xff] %v1342_v58 }
 0x1c5   : > { %v1989_v57 = vpop.eup %1988  ;;  %2006 = vrcp.f32 %v1220_v27  ;;  %v1222_v33 = vadd.f32 1.0, %v1987_v34 }
 0x1c6   : > { %v1991_v40 = vpop.eup %1990  ;;  %2008 = vrcp.f32 %v1221_v41  ;;  %v1223_v61 = vadd.f32 1.0, %v1989_v57  ;;  %1375 = vst [vmem:[%s2592_s9 + $0x98] sm:$0xff] %v1343_v42  ;;  %v813_v42 = vadd.f32 %v2760_v17, %v2549_v19 }
 0x1c7   : > { %v1993_v39 = vpop.eup %1992  ;;  %v1312_v4 = vmul.f32 %v1991_v40, %v2636_v3  ;;  %2010 = vrcp.f32 %v1222_v33  ;;  %v793_v3 = vadd.f32 %v2696_v15, %v2549_v19 }
 0x1c8   : > { %v1995_v24 = vpop.eup %1994  ;;  %v1313_v6 = vmul.f32 %v1993_v39, %v2642_v18  ;;  %2012 = vrcp.f32 %v1223_v61 }
 0x1c9   : > { %v1997_v0 = vpop.eup %1996  ;;  %v1314_v63 = vmul.f32 %v1995_v24, %v2649_v59  ;;  %v1344_v43 = vmul.f32 %v1312_v4, %v787_v36 }
 0x1ca   : > { %v1999_v47 = vpop.eup %1998  ;;  %v1315_v8 = vmul.f32 %v1997_v0, %v2656_v30  ;;  %v1345_v11 = vmul.f32 %v1313_v6, %v789_v44  ;;  %v797_v30 = vadd.f32 %v2715_v60, %v2545_v12 }
 0x1cb   : > { %v2001_v25 = vpop.eup %2000  ;;  %v1224_v18 = vadd.f32 1.0, %v1999_v47  ;;  %1376 = vst [vmem:[%s2592_s9 + $0xa0] sm:$0xff] %v1344_v43  ;;  %v1346_v10 = vmul.f32 %v1314_v63, %v791_v9 }
 0x1cc   : > { %v2003_v28 = vpop.eup %2002  ;;  %v1225_v35 = vadd.f32 1.0, %v2001_v25  ;;  %1377 = vst [vmem:[%s2592_s9 + $0xa8] sm:$0xff] %v1345_v11  ;;  %v1347_v59 = vmul.f32 %v1315_v8, %v793_v3 }
 0x1cd   : > { %v2005_v37 = vpop.eup %2004  ;;  %2014 = vrcp.f32 %v1224_v18  ;;  %v1226_v45 = vadd.f32 1.0, %v2003_v28  ;;  %1378 = vst [vmem:[%s2592_s9 + $0xb0] sm:$0xff] %v1346_v10 }
 0x1ce   : > { %2016 = vrcp.f32 %v1225_v35  ;;  %v1227_v21 = vadd.f32 1.0, %v2005_v37  ;;  %1379 = vst [vmem:[%s2592_s9 + $0xb8] sm:$0xff] %v1347_v59 }
 0x1cf   : > { %v2007_v15 = vpop.eup %2006  ;;  %2018 = vrcp.f32 %v1226_v45 }
 0x1d0   : > { %v2009_v38 = vpop.eup %2008  ;;  %v1316_v49 = vmul.f32 %v2007_v15, %v2673_v62  ;;  %2020 = vrcp.f32 %v1227_v21  ;;  %v803_v62 = vadd.f32 %v2733_v32, %v2549_v19 }
 0x1d1   : > { %v2011_v22 = vpop.eup %2010  ;;  %v1317_v52 = vmul.f32 %v2009_v38, %v2679_v51  ;;  %v807_v51 = vadd.f32 %v2749_v54, %v2545_v12 }
 0x1d2   : > { %v2013_v53 = vpop.eup %2012  ;;  %v1318_v29 = vmul.f32 %v2011_v22, %v2687_v5  ;;  %v1348_v60 = vmul.f32 %v1316_v49, %v797_v30 }
 0x1d3   : > { %v1319_v55 = vmul.f32 %v2013_v53, %v2694_v13  ;;  %v1349_v50 = vmul.f32 %v1317_v52, %v799_v1  ;;  %v809_v13 = vadd.f32 %v2754_v23, %v2549_v19  ;;  %v811_v23 = vadd.f32 %v2757_v16, %v2545_v12 }
 0x1d4   : > { %1380 = vst [vmem:[%s2592_s9 + $0xc0] sm:$0xff] %v1348_v60  ;;  %v1350_v56 = vmul.f32 %v1318_v29, %v801_v48 }
 0x1d5   : > { %1381 = vst [vmem:[%s2592_s9 + $0xc8] sm:$0xff] %v1349_v50  ;;  %v1351_v14 = vmul.f32 %v1319_v55, %v803_v62 }
 0x1d6   : > { %1382 = vst [vmem:[%s2592_s9 + $0xd0] sm:$0xff] %v1350_v56 }
 0x1d7   : > { %v2015_v5 = vpop.eup %2014  ;;  %1383 = vst [vmem:[%s2592_s9 + $0xd8] sm:$0xff] %v1351_v14 }
 0x1d8   : > { %v2017_v2 = vpop.eup %2016  ;;  %v1320_v31 = vmul.f32 %v2015_v5, %v2713_v20 }
 0x1d9   : > { %v2019_v27 = vpop.eup %2018  ;;  %v1321_v32 = vmul.f32 %v2017_v2, %v2719_v46 }
 0x1da   : > { %v2021_v58 = vpop.eup %2020  ;;  %v1322_v54 = vmul.f32 %v2019_v27, %v2731_v7  ;;  %v1352_v34 = vmul.f32 %v1320_v31, %v807_v51 }
 0x1db   : > { %v1323_v41 = vmul.f32 %v2021_v58, %v2738_v26  ;;  %v1353_v20 = vmul.f32 %v1321_v32, %v809_v13 }
 0x1dc   : > { %1384 = vst [vmem:[%s2592_s9 + $0xe0] sm:$0xff] %v1352_v34  ;;  %v1354_v46 = vmul.f32 %v1322_v54, %v811_v23 }
 0x1dd   : > { %1385 = vst [vmem:[%s2592_s9 + $0xe8] sm:$0xff] %v1353_v20  ;;  %v1355_v12 = vmul.f32 %v1323_v41, %v813_v42 }
 0x1de   : > { %1386 = vst [vmem:[%s2592_s9 + $0xf0] sm:$0xff] %v1354_v46 }
 0x1df   : > { %1387 = vst [vmem:[%s2592_s9 + $0xf8] sm:$0xff] %v1355_v12 }
 0x1e0   : > { %2121 = shalt.err (!%p2118_p11)
}
 0x1e1   : > { %s2122_s28 = scalar_lea.hbm %s2814_s7, 4096  ;;  %s2126_s6 = scalar_lea.hbm %s2873_s5, 8192 }
 0x1e2   : > { %p2123_p0 = scmp.ne.s32.totalorder %s2814_s7, %s2122_s28  ;;  %p2127_p6 = scmp.lt.u32.totalorder %s2814_s7, %s2873_s5 }
 0x1e3   : > { %p2128_p7 = scmp.lt.u32.totalorder %s2126_s6, %s2122_s28  ;;  %p2130_p8 = scmp.lt.u32.totalorder %s2122_s28, %s2814_s7 }
 0x1e4   : > { %p2124_p4 = pnand %p2123_p0, %p2890_p12 }
 0x1e5   : > { %p2129_p2 = por %p2128_p7, %p2127_p6 }
 0x1e6   : > { %p2125_p13 = pneg %p2124_p4 }
 0x1e7   : > { %p2131_p1 = por %p2130_p8, %p2129_p2 }
 0x1e9   : > { %p2132_p10 = pnand %p2131_p1, %p2125_p13 }
 0x1eb   : > { %2135 = shalt.err (!%p2132_p10)
}
 0x1ec   : > { %s2202_s21 = smov 256   ;;  %s2203_s16 = smov 16  }
 0x1ed   : > { %1697 = dma.vmem_to_hbm [thread:$0]  (%p2890_p12), %s2816_s12, 4096, %s2814_s7, %s1389_s14, %s2202_s21, %s2202_s21, %s2203_s16  }
 0x1ee PF: > { %s1420_s27 = sand.u32 1, %s2174_s18   ;;  %p2891_p3 = scmp.ne.s32.totalorder %s2882_s29, 0 }
 0x1ef   : > { %p2892_p5 = scmp.ge.s32.totalorder %s2194_s23, 2  ;;  %s1421_s15 = scalar_lea.sflag [#allocation4], %s1420_s27 }
 0x1f1   : > { %p1711_p9 = pnand %p2892_p5, %p2891_p3 }
 0x1f3   : > { %2169 = dma.done.wait (!%p1711_p9), %s1421_s15, 4096  }
 0x1f4   : > { %2171 = vsyncadd (!%p1711_p9), %s1421_s15, 4294963200  ;;  %s22_s23 = sadd.s32 1, %s2194_s23   ;;  %s2893_s18 = smov %s2178_s19 }
 0x1f5   : > { %p19_p11 = scmp.ge.s32.totalorder %s22_s23, 4   ;;  %s2894_s19 = smov %s2182_s20 }
 0x1f6   : > { %s2895_s20 = smov %s2382_s17  ;;  %s2896_s21 = smov %s2190_s22 }
 0x1f7   : > { %s2897_s22 = smov %s2899_s8  ;;  %21 = sbr.rel (!%p19_p11) target bundleno = 7 (0x7), region = 101 }
 0x1fe   :  { %1426 = vsyncpa [#allocation3], 1 }
 0x1ff   :  { %1428 = vsyncpa [#allocation3 + $0x1], 1 }
 0x200   :  { %1429 = vsyncpa [#allocation6], 1 }
 0x201   :  { %1430 = vsyncpa [#allocation4], 1 }
 0x202   :  { %1432 = vsyncpa [#allocation4 + $0x1], 1 }

</bundles_post_ra>
